<compile_context>
chip_gen: v7x
topology: tpu7x:2x2x1
jax: 0.10.0
libtpu: 0.0.40
codegen_flags: <defaults>
</compile_context>

<pallas_src>
import math

import numpy as np
import jax
import jax.numpy as jnp
from jax import lax
from jax.experimental import pallas as pl
from jax.experimental.pallas import tpu as pltpu


def _shifted_dft_mats(h, w):
    """Complex DFT matrices with fftshift folded in.

    Forward (shifted) spectrum:  X_s = L_FWD @ x @ R_FWD
    Inverse:                     x   = Re(L_INV @ Y_s @ R_INV)
    """
    def shifted(n):
        k = np.arange(n)
        f = np.exp(-2j * np.pi * np.outer(k, k) / n)
        return np.roll(f, n // 2, axis=0)            # fftshift baked into rows

    fh_s = shifted(h)
    fw_s = shifted(w)
    l_fwd = fh_s
    r_fwd = fw_s.T
    l_inv = np.conj(fh_s).T / h
    r_inv = np.conj(fw_s) / w
    return l_fwd, r_fwd, l_inv, r_inv


# ---------------- pass 1: forward shifted DFT + amplitude partial sum --------
def _fwd_kernel(x_ref, lfr_ref, lfi_ref, rbr_ref, rbi_ref,
                xr_ref, xi_ref, sum_ref):
    x = x_ref[...]                                            # (H, TB*W)
    # row transform: one (H,H) @ (H, TB*W) matmul per real/imag part
    tr = jnp.dot(lfr_ref[...], x, preferred_element_type=jnp.float32)
    ti = jnp.dot(lfi_ref[...], x, preferred_element_type=jnp.float32)
    # column transform: block-diagonal kron(I_TB, R_FWD) -> lane-dense matmuls
    rbr = rbr_ref[...]
    rbi = rbi_ref[...]
    xr = (jnp.dot(tr, rbr, preferred_element_type=jnp.float32)
          - jnp.dot(ti, rbi, preferred_element_type=jnp.float32))
    xi = (jnp.dot(tr, rbi, preferred_element_type=jnp.float32)
          + jnp.dot(ti, rbr, preferred_element_type=jnp.float32))
    xr_ref[...] = xr
    xi_ref[...] = xi
    # per-tile partial sum of the amplitude -> scalar in SMEM
    sum_ref[0, 0] = jnp.sum(jnp.sqrt(xr * xr + xi * xi))


# ---------------- pass 2: noise in polar form + inverse shifted DFT ----------
def _inv_kernel(coef_ref, xr_ref, xi_ref, mask_ref, noise_ref,
                lir_ref, lii_ref, rbr_ref, rbi_ref, o_ref):
    xr = xr_ref[...]
    xi = xi_ref[...]
    s = xr * xr + xi * xi
    nz = s > 0.0
    # one guarded rsqrt (EUP slot) instead of sqrt + two divides
    r = jnp.where(nz, lax.rsqrt(jnp.where(nz, s, 1.0)), 0.0)
    amp = s * r                                               # |X|
    c = coef_ref[0, 0]                                        # noise_factor*scale*mean
    new_amp = mask_ref[...] * (noise_ref[...] * c) + amp
    # torch.polar(new_amp, angle(X)) without trig; angle(0) == 0
    cosp = jnp.where(nz, xr * r, 1.0)
    sinp = jnp.where(nz, xi * r, 0.0)
    yr = new_amp * cosp
    yi = new_amp * sinp
    # inverse shifted DFT, keep the real part only
    ur = (jnp.dot(lir_ref[...], yr, preferred_element_type=jnp.float32)
          - jnp.dot(lii_ref[...], yi, preferred_element_type=jnp.float32))
    ui = (jnp.dot(lir_ref[...], yi, preferred_element_type=jnp.float32)
          + jnp.dot(lii_ref[...], yr, preferred_element_type=jnp.float32))
    o_ref[...] = (jnp.dot(ur, rbr_ref[...], preferred_element_type=jnp.float32)
                  - jnp.dot(ui, rbi_ref[...], preferred_element_type=jnp.float32))


class AddRayleighNoisePallas:
    def __init__(self, input_height, input_width, channel, batch_size,
                 alpha=0.15, scale=1.0, gaussain=False):
        self.alpha = alpha
        self.scale = float(scale)
        self.gaussain = gaussain
        self.h = int(input_height)
        self.w = int(input_width)
        self.channel = channel
        self.batch_size = batch_size
        # rayleigh path: np.random.rayleigh(scale=sqrt(2/pi)*mean) == unit-Rayleigh
        # samples * sqrt(2/pi)*mean; gaussian path: unit normals * mean.
        self.noise_factor = 1.0 if gaussain else float(np.sqrt(2.0 / np.pi))

        h, w = self.h, self.w
        # bc-tile size: make the lane dim of every block (tb*W) a multiple of 128
        self.tb = max(1, 128 // math.gcd(w, 128))
        tbw = self.tb * w

        # radial high-pass mask (identical across channels in the PyTorch buffer)
        ch = (h - 1) / 2.0
        cw = (w - 1) / 2.0
        max_radius = min(ch, cw, h - ch, w - cw)
        radius = max_radius * alpha
        ii = np.arange(h)[:, None]
        jj = np.arange(w)[None, :]
        mask2d = ((ii - ch) ** 2 + (jj - cw) ** 2 >= radius ** 2).astype(np.float32)
        self.mask2d = jnp.asarray(mask2d)
        # one tile worth of mask (H, tb*W): no (bc,H,W) host-side broadcast
        self.mask_tile = jnp.asarray(np.tile(mask2d, (1, self.tb)))

        # DFT matrices; the column-transform matrices are block-diagonal
        # kron(I_tb, .) so the packed (H, tb*W) layout needs no in-kernel reshapes.
        l_fwd, r_fwd, l_inv, r_inv = _shifted_dft_mats(h, w)
        eye = np.eye(self.tb)
        rf_blk = np.kron(eye, r_fwd)
        ri_blk = np.kron(eye, r_inv)
        f32 = lambda m: jnp.asarray(np.ascontiguousarray(m), jnp.float32)
        self.lfr, self.lfi = f32(l_fwd.real), f32(l_fwd.imag)
        self.rbr, self.rbi = f32(rf_blk.real), f32(rf_blk.imag)
        self.lir, self.lii = f32(l_inv.real), f32(l_inv.imag)
        self.rir, self.rii = f32(ri_blk.real), f32(ri_blk.imag)

    def __call__(self, x, key):
        b, c, h, w = x.shape
        assert h == self.h and w == self.w
        bc = b * c
        tb = self.tb
        tbw = tb * w
        nt = -(-bc // tb)            # number of bc tiles (grid size)
        bcp = nt * tb                # bc padded to a multiple of the tile

        x3 = x.reshape(bc, h, w).astype(jnp.float32)

        # TODO(synk): np.random.rayleigh is a host-side numpy RNG; reproduced with
        # jax.random (statistically equivalent, not bit-identical).  An in-kernel
        # pltpu.prng_* generator would remove this HBM stream, but the unit
        # samples are returned so the self-test can share them with the reference.
        if self.gaussain:
            unit = jax.random.normal(key, (bc, h, w), jnp.float32)
        else:
            u = jax.random.uniform(key, (bc, h, w), jnp.float32,
                                   minval=1e-7, maxval=1.0)
            unit = jnp.sqrt(-2.0 * jnp.log(u))        # unit-sigma Rayleigh

        def pack(a):   # (bc, H, W) -> lane-dense (H, bcp*W)
            a = jnp.transpose(a, (1, 0, 2))
            if bcp != bc:
                a = jnp.pad(a, ((0, 0), (0, bcp - bc), (0, 0)))
            return a.reshape(h, bcp * w)

        x2 = pack(x3)
        unit2 = pack(unit)

        blk = lambda: pl.BlockSpec((h, tbw), lambda i: (0, i))
        rep = lambda shp: pl.BlockSpec(shp, lambda i: (0, 0))
        smem_out = pl.BlockSpec((1, 1), lambda i: (i, 0),
                                memory_space=pltpu.MemorySpace.SMEM)
        smem_in = pl.BlockSpec((1, 1), lambda i: (0, 0),
                               memory_space=pltpu.MemorySpace.SMEM)
        params = pltpu.CompilerParams(dimension_semantics=("parallel",))
        # Per-tile VMEM working set ~ (5*h*tbw + 2*tbw*tbw + 2*h*h) * 4 B, well
        # under the scoped defaults of v5e/v6e/v7x -> no vmem_limit override.

        hbw = h * bcp * w
        fwd_cost = pl.CostEstimate(
            flops=int(nt * (2 * 2 * h * h * tbw + 4 * 2 * h * tbw * tbw)),
            transcendentals=int(hbw),
            bytes_accessed=int(4 * (3 * hbw + 2 * h * h + 2 * tbw * tbw + nt)))
        inv_cost = pl.CostEstimate(
            flops=int(nt * (4 * 2 * h * h * tbw + 2 * 2 * h * tbw * tbw)),
            transcendentals=int(hbw),
            bytes_accessed=int(4 * (4 * hbw + h * tbw + 2 * h * h + 2 * tbw * tbw + 1)))

        # pass 1: forward shifted DFT + per-tile amplitude partial sums
        xr2, xi2, psums = pl.pallas_call(
            _fwd_kernel,
            grid=(nt,),
            in_specs=[blk(), rep((h, h)), rep((h, h)),
                      rep((tbw, tbw)), rep((tbw, tbw))],
            out_specs=(blk(), blk(), smem_out),
            out_shape=(jax.ShapeDtypeStruct((h, bcp * w), jnp.float32),
                       jax.ShapeDtypeStruct((h, bcp * w), jnp.float32),
                       jax.ShapeDtypeStruct((nt, 1), jnp.float32)),
            compiler_params=params,
            cost_estimate=fwd_cost,
        )(x2, self.lfr, self.lfi, self.rbr, self.rbi)

        # global mean couples all slices -> reduce between the two passes
        mean = jnp.sum(psums) / float(bc * h * w)
        coef = (mean * (self.scale * self.noise_factor)
                ).astype(jnp.float32).reshape(1, 1)

        # pass 2: noise apply + inverse shifted DFT (output aliases the xr buffer)
        out2 = pl.pallas_call(
            _inv_kernel,
            grid=(nt,),
            in_specs=[smem_in, blk(), blk(), rep((h, tbw)), blk(),
                      rep((h, h)), rep((h, h)),
                      rep((tbw, tbw)), rep((tbw, tbw))],
            out_specs=blk(),
            out_shape=jax.ShapeDtypeStruct((h, bcp * w), jnp.float32),
            input_output_aliases={1: 0},
            compiler_params=params,
            cost_estimate=inv_cost,
        )(coef, xr2, xi2, self.mask_tile, unit2,
          self.lir, self.lii, self.rir, self.rii)

        out3 = jnp.transpose(out2.reshape(h, bcp, w)[:, :bc, :], (1, 0, 2))
        return out3.reshape(b, c, h, w), unit


def reference(x, mask2d, unit, scale, noise_factor):
    """Pure-JAX replica of the PyTorch forward (same unit noise samples)."""
    xf = jnp.fft.fftshift(jnp.fft.fft2(x.astype(jnp.complex64), axes=(-2, -1)),
                          axes=(-2, -1))
    amp = jnp.abs(xf)
    ph = jnp.angle(xf)
    mean = jnp.mean(amp) * scale
    noise = unit.reshape(x.shape) * (noise_factor * mean)
    amp2 = mask2d * noise + amp
    yf = amp2 * jnp.exp(1j * ph)
    y = jnp.fft.ifft2(jnp.fft.ifftshift(yf, axes=(-2, -1)), axes=(-2, -1))
    return jnp.real(y)


if __name__ == "__main__":
    B, C, H, W = 2, 4, 16, 16
    key = jax.random.PRNGKey(0)
    kx, kn = jax.random.split(key)
    x = jax.random.normal(kx, (B, C, H, W), jnp.float32)

    mod = AddRayleighNoisePallas(H, W, C, B, alpha=0.15, scale=1.0, gaussain=False)
    y, unit = mod(x, kn)
    y = jax.block_until_ready(y)

    ref = reference(x, mod.mask2d, unit, mod.scale, mod.noise_factor)
    err = float(jnp.max(jnp.abs(y - ref)))
    assert np.isfinite(np.asarray(y)).all()
    assert err < 0.2, f"max abs diff vs reference too large: {err}"
    print("KERNEL_OK")
</pallas_src>

<mosaic_0001>
module attributes {stable_mosaic.version = 11 : i64} {
  func.func @_fwd_kernel(%arg0: i32, %arg1: memref<16x128xf32, #tpu.memory_space<vmem>>, %arg2: memref<16x16xf32, #tpu.memory_space<vmem>>, %arg3: memref<16x16xf32, #tpu.memory_space<vmem>>, %arg4: memref<128x128xf32, #tpu.memory_space<vmem>>, %arg5: memref<128x128xf32, #tpu.memory_space<vmem>>, %arg6: memref<16x128xf32, #tpu.memory_space<vmem>>, %arg7: memref<16x128xf32, #tpu.memory_space<vmem>>, %arg8: memref<1x1xf32, #tpu.memory_space<smem>>) attributes {dimension_semantics = [#tpu.dimension_semantics<parallel>], iteration_bounds = array<i64: 1>, scalar_prefetch = 0 : i64, scratch_operands = 0 : i64, tpu.core_type = #tpu.core_type<tc>, window_params = [{transform_indices = @transform_0, window_bounds = array<i64: 16, 128>}, {pipeline_mode = #tpu.pipeline_mode<synchronous>, transform_indices = @transform_1, window_bounds = array<i64: 16, 16>}, {pipeline_mode = #tpu.pipeline_mode<synchronous>, transform_indices = @transform_2, window_bounds = array<i64: 16, 16>}, {pipeline_mode = #tpu.pipeline_mode<synchronous>, transform_indices = @transform_3, window_bounds = array<i64: 128, 128>}, {pipeline_mode = #tpu.pipeline_mode<synchronous>, transform_indices = @transform_4, window_bounds = array<i64: 128, 128>}, {transform_indices = @transform_5, window_bounds = array<i64: 16, 128>}, {transform_indices = @transform_6, window_bounds = array<i64: 16, 128>}, {transform_indices = @transform_7, window_bounds = array<i64: 1, 1>}]} {
    %c0 = arith.constant 0 : index
    %c0_0 = arith.constant 0 : index
    %0 = vector.load %arg1[%c0, %c0_0] : memref<16x128xf32, #tpu.memory_space<vmem>>, vector<16x128xf32>
    %c0_1 = arith.constant 0 : index
    %c0_2 = arith.constant 0 : index
    %1 = vector.load %arg2[%c0_1, %c0_2] : memref<16x16xf32, #tpu.memory_space<vmem>>, vector<16x16xf32>
    %cst = arith.constant dense<0.000000e+00> : vector<16x128xf32>
    %2 = tpu.matmul %1, %0, %cst {dimension_numbers = #tpu.dot_dimension_numbers<[1], [0], [0], [1], [0, 0, 1, 1], [], []>} : vector<16x16xf32>, vector<16x128xf32>, vector<16x128xf32> -> vector<16x128xf32>
    %c0_3 = arith.constant 0 : index
    %c0_4 = arith.constant 0 : index
    %3 = vector.load %arg3[%c0_3, %c0_4] : memref<16x16xf32, #tpu.memory_space<vmem>>, vector<16x16xf32>
    %cst_5 = arith.constant dense<0.000000e+00> : vector<16x128xf32>
    %4 = tpu.matmul %3, %0, %cst_5 {dimension_numbers = #tpu.dot_dimension_numbers<[1], [0], [0], [1], [0, 0, 1, 1], [], []>} : vector<16x16xf32>, vector<16x128xf32>, vector<16x128xf32> -> vector<16x128xf32>
    %c0_6 = arith.constant 0 : index
    %c0_7 = arith.constant 0 : index
    %5 = vector.load %arg4[%c0_6, %c0_7] : memref<128x128xf32, #tpu.memory_space<vmem>>, vector<128x128xf32>
    %c0_8 = arith.constant 0 : index
    %c0_9 = arith.constant 0 : index
    %6 = vector.load %arg5[%c0_8, %c0_9] : memref<128x128xf32, #tpu.memory_space<vmem>>, vector<128x128xf32>
    %cst_10 = arith.constant dense<0.000000e+00> : vector<16x128xf32>
    %7 = tpu.matmul %2, %5, %cst_10 {dimension_numbers = #tpu.dot_dimension_numbers<[1], [0], [0], [1], [0, 0, 1, 1], [], []>} : vector<16x128xf32>, vector<128x128xf32>, vector<16x128xf32> -> vector<16x128xf32>
    %cst_11 = arith.constant dense<0.000000e+00> : vector<16x128xf32>
    %8 = tpu.matmul %4, %6, %cst_11 {dimension_numbers = #tpu.dot_dimension_numbers<[1], [0], [0], [1], [0, 0, 1, 1], [], []>} : vector<16x128xf32>, vector<128x128xf32>, vector<16x128xf32> -> vector<16x128xf32>
    %9 = arith.subf %7, %8 : vector<16x128xf32>
    %cst_12 = arith.constant dense<0.000000e+00> : vector<16x128xf32>
    %10 = tpu.matmul %2, %6, %cst_12 {dimension_numbers = #tpu.dot_dimension_numbers<[1], [0], [0], [1], [0, 0, 1, 1], [], []>} : vector<16x128xf32>, vector<128x128xf32>, vector<16x128xf32> -> vector<16x128xf32>
    %cst_13 = arith.constant dense<0.000000e+00> : vector<16x128xf32>
    %11 = tpu.matmul %4, %5, %cst_13 {dimension_numbers = #tpu.dot_dimension_numbers<[1], [0], [0], [1], [0, 0, 1, 1], [], []>} : vector<16x128xf32>, vector<128x128xf32>, vector<16x128xf32> -> vector<16x128xf32>
    %12 = arith.addf %10, %11 : vector<16x128xf32>
    %c0_14 = arith.constant 0 : index
    %c0_15 = arith.constant 0 : index
    %13 = vector.load %arg6[%c0_14, %c0_15] : memref<16x128xf32, #tpu.memory_space<vmem>>, vector<16x128xf32>
    tpu.vector_store %arg6[%c0_14, %c0_15], %9 {strides = array<i32>} : memref<16x128xf32, #tpu.memory_space<vmem>>, vector<16x128xf32>,
    %c0_16 = arith.constant 0 : index
    %c0_17 = arith.constant 0 : index
    %14 = vector.load %arg7[%c0_16, %c0_17] : memref<16x128xf32, #tpu.memory_space<vmem>>, vector<16x128xf32>
    tpu.vector_store %arg7[%c0_16, %c0_17], %12 {strides = array<i32>} : memref<16x128xf32, #tpu.memory_space<vmem>>, vector<16x128xf32>,
    %15 = arith.mulf %9, %9 : vector<16x128xf32>
    %16 = arith.mulf %12, %12 : vector<16x128xf32>
    %17 = arith.addf %15, %16 : vector<16x128xf32>
    %18 = math.sqrt %17 : vector<16x128xf32>
    %19 = vector.shape_cast %18 : vector<16x128xf32> to vector<1x16x128xf32>
    %cst_18 = arith.constant dense<0.000000e+00> : vector<1xf32>
    %20 = vector.multi_reduction <add>, %19, %cst_18 [1, 2] : vector<1x16x128xf32> to vector<1xf32>
    %21 = vector.shape_cast %20 : vector<1xf32> to vector<1x1x1xf32>
    %22 = vector.extract %21[0, 0, 0] : f32 from vector<1x1x1xf32>
    %c0_19 = arith.constant 0 : index
    %c0_20 = arith.constant 0 : index
    %23 = memref.load %arg8[%c0_19, %c0_20] : memref<1x1xf32, #tpu.memory_space<smem>>
    memref.store %22, %arg8[%c0_19, %c0_20] : memref<1x1xf32, #tpu.memory_space<smem>>
    return
  }
  func.func @transform_0(%arg0: i32) -> (i32, i32) {
    %c0_i32 = arith.constant 0 : i32
    %c0_i32_0 = arith.constant 0 : i32
    return %c0_i32, %arg0 : i32, i32
  }
  func.func @transform_1(%arg0: i32) -> (i32, i32) {
    %c0_i32 = arith.constant 0 : i32
    %c0_i32_0 = arith.constant 0 : i32
    %c0_i32_1 = arith.constant 0 : i32
    return %c0_i32, %c0_i32_0 : i32, i32
  }
  func.func @transform_2(%arg0: i32) -> (i32, i32) {
    %c0_i32 = arith.constant 0 : i32
    %c0_i32_0 = arith.constant 0 : i32
    %c0_i32_1 = arith.constant 0 : i32
    return %c0_i32, %c0_i32_0 : i32, i32
  }
  func.func @transform_3(%arg0: i32) -> (i32, i32) {
    %c0_i32 = arith.constant 0 : i32
    %c0_i32_0 = arith.constant 0 : i32
    %c0_i32_1 = arith.constant 0 : i32
    return %c0_i32, %c0_i32_0 : i32, i32
  }
  func.func @transform_4(%arg0: i32) -> (i32, i32) {
    %c0_i32 = arith.constant 0 : i32
    %c0_i32_0 = arith.constant 0 : i32
    %c0_i32_1 = arith.constant 0 : i32
    return %c0_i32, %c0_i32_0 : i32, i32
  }
  func.func @transform_5(%arg0: i32) -> (i32, i32) {
    %c0_i32 = arith.constant 0 : i32
    %c0_i32_0 = arith.constant 0 : i32
    return %c0_i32, %arg0 : i32, i32
  }
  func.func @transform_6(%arg0: i32) -> (i32, i32) {
    %c0_i32 = arith.constant 0 : i32
    %c0_i32_0 = arith.constant 0 : i32
    return %c0_i32, %arg0 : i32, i32
  }
  func.func @transform_7(%arg0: i32) -> (i32, i32) {
    %c0_i32 = arith.constant 0 : i32
    %c0_i32_0 = arith.constant 0 : i32
    return %arg0, %c0_i32 : i32, i32
  }
}

</mosaic_0001>

<bundles_post_ra>
// kernel: tpu_custom_call.1
= control target key start
LH: loop header
LB: loop body
LE: loop exit
PB: predicated region body
PF: predicated region fallthrough
CT: control target
= control target key end

     0   :  { %13 = vsyncpa [#allocation3], 0  ;;  %s1441_s0 = inlined_call_operand.hbm [shape: f32[16,128], index: 0, kind: input, shape index: {}]   ;;  %s1442_s1 = inlined_call_operand.hbm [shape: f32[16,16], index: 1, kind: input, shape index: {}]   ;;  %s1443_s2 = inlined_call_operand.hbm [shape: f32[16,16], index: 2, kind: input, shape index: {}]   ;;  %s1444_s3 = inlined_call_operand.hbm [shape: f32[128,128], index: 3, kind: input, shape index: {}]   ;;  %s1445_s4 = inlined_call_operand.hbm [shape: f32[128,128], index: 4, kind: input, shape index: {}]   ;;  %s1446_s5 = inlined_call_operand.hbm [shape: f32[16,128], index: 5, kind: output, shape index: {0}]   ;;  %s1447_s6 = inlined_call_operand.hbm [shape: f32[16,128], index: 6, kind: output, shape index: {1}]   ;;  %s1448_s7 = inlined_call_operand.hbm [shape: f32[1,1], index: 7, kind: output, shape index: {2}]  }
   0x1   :  { %14 = vsyncpa [#allocation7], 0 }
   0x2   :  { %15 = vsyncpa [#allocation10], 0 }
   0x3   :  { %16 = vsyncpa [#allocation4], 0 }
   0x4   :  { %17 = vsyncpa [#allocation14], 0 }
   0x5   :  { %18 = vsyncpa [#allocation5], 0  ;;  %s1249_s24 = smov [#allocation6]   ;;  %s1250_s26 = smov [#allocation9]  }
   0x6   :  { %s36_s25 = sshll.u32 %s1249_s24, 4  ;;  %s60_s27 = sshll.u32 %s1250_s26, 4  ;;  %s37_s25 = int_to_ptr.vmem [resolvable:$true] %s36_s25  ;;  %s1299_s27 = int_to_ptr.vmem [resolvable:$true] %s60_s27 }
   0x7   :  { %s1073_s30 = scalar_lea.hbm %s1442_s1, 256 }
   0x8   :  { %p1074_p0 = scmp.ne.s32.totalorder %s1442_s1, %s1073_s30  ;;  %p1077_p1 = scmp.lt.u32.totalorder %s1073_s30, %s1442_s1 }
   0xa   :  { %p1079_p2 = pnand %p1077_p1, %p1074_p0 }
   0xc   :  { %1082 = shalt.err (!%p1079_p2)
}
   0xd   :  { %s1083_s12 = scalar_lea.vmem %s37_s25, 256  ;;  %p1088_p4 = scmp.lt.s32.totalorder %s37_s25, %s37_s25 }
   0xe   :  { %p1084_p3 = scmp.ne.s32.totalorder %s37_s25, %s1083_s12  ;;  %p1089_p5 = scmp.lt.s32.totalorder %s1083_s12, %s1083_s12 }
  0x10   :  { %p1090_p6 = por %p1089_p5, %p1088_p4 }
  0x12   :  { %p1091_p7 = pnand %p1090_p6, %p1084_p3 }
  0x14   :  { %1094 = shalt.err (!%p1091_p7)
}
  0x15   :  { %s1251_s13 = smov 128   ;;  %s1252_s14 = smov 8  }
  0x16   :  { %42 = dma.hbm_to_vmem [thread:$0]  %s1442_s1, 256, %s37_s25, [#allocation7], %s1251_s13, %s1251_s13, %s1252_s14  }
  0x17   :  { %s1095_s19 = scalar_lea.hbm %s1444_s3, 2048 }
  0x18   :  { %p1096_p8 = scmp.ne.s32.totalorder %s1444_s3, %s1095_s19  ;;  %p1099_p9 = scmp.lt.u32.totalorder %s1095_s19, %s1444_s3 }
  0x1a   :  { %p1101_p10 = pnand %p1099_p9, %p1096_p8 }
  0x1c   :  { %1104 = shalt.err (!%p1101_p10)
}
  0x1d   :  { %s1105_s24 = scalar_lea.vmem %s1299_s27, 2048  ;;  %p1110_p12 = scmp.lt.s32.totalorder %s1299_s27, %s1299_s27 }
  0x1e   :  { %p1106_p11 = scmp.ne.s32.totalorder %s1299_s27, %s1105_s24  ;;  %p1111_p13 = scmp.lt.s32.totalorder %s1105_s24, %s1105_s24 }
  0x20   :  { %p1112_p0 = por %p1111_p13, %p1110_p12 }
  0x22   :  { %p1113_p1 = pnand %p1112_p0, %p1106_p11 }
  0x24   :  { %1116 = shalt.err (!%p1113_p1)
}
  0x25   :  { %66 = dma.hbm_to_vmem [thread:$0]  %s1444_s3, 2048, %s1299_s27, [#allocation10], %s1251_s13, %s1251_s13, %s1252_s14  }
  0x26   :  { %s1253_s26 = smov [#allocation2]   ;;  %s1254_s29 = smov [#allocation8]  }
  0x27   :  { %s24_s28 = sshll.u32 %s1253_s26, 4  ;;  %s48_s30 = sshll.u32 %s1254_s29, 4  ;;  %s25_s28 = int_to_ptr.vmem [resolvable:$true] %s24_s28  ;;  %s1336_s30 = int_to_ptr.vmem [resolvable:$true] %s48_s30 }
  0x28   :  { %s1117_s10 = scalar_lea.hbm %s1441_s0, 256 }
  0x29   :  { %p1118_p2 = scmp.ne.s32.totalorder %s1441_s0, %s1117_s10  ;;  %p1121_p3 = scmp.lt.u32.totalorder %s1117_s10, %s1441_s0 }
  0x2b   :  { %p1123_p4 = pnand %p1121_p3, %p1118_p2 }
  0x2d   :  { %1126 = shalt.err (!%p1123_p4)
}
  0x2e   :  { %s1127_s3 = scalar_lea.vmem %s25_s28, 256  ;;  %p1132_p6 = scmp.lt.s32.totalorder %s25_s28, %s25_s28 }
  0x2f   :  { %p1128_p5 = scmp.ne.s32.totalorder %s25_s28, %s1127_s3  ;;  %p1133_p7 = scmp.lt.s32.totalorder %s1127_s3, %s1127_s3 }
  0x31   :  { %p1134_p8 = por %p1133_p7, %p1132_p6 }
  0x33   :  { %p1135_p9 = pnand %p1134_p8, %p1128_p5 }
  0x35   :  { %1138 = shalt.err (!%p1135_p9)
}
  0x36   :  { %30 = dma.hbm_to_vmem [thread:$0]  %s1441_s0, 256, %s25_s28, [#allocation3], %s1251_s13, %s1251_s13, %s1252_s14  }
  0x37   :  { %s1139_s20 = scalar_lea.hbm %s1443_s2, 256 }
  0x38   :  { %p1140_p10 = scmp.ne.s32.totalorder %s1443_s2, %s1139_s20  ;;  %p1143_p11 = scmp.lt.u32.totalorder %s1139_s20, %s1443_s2 }
  0x3a   :  { %p1145_p12 = pnand %p1143_p11, %p1140_p10 }
  0x3c   :  { %1148 = shalt.err (!%p1145_p12)
}
  0x3d   :  { %s1149_s1 = scalar_lea.vmem %s1336_s30, 256  ;;  %p1154_p0 = scmp.lt.s32.totalorder %s1336_s30, %s1336_s30 }
  0x3e   :  { %p1150_p13 = scmp.ne.s32.totalorder %s1336_s30, %s1149_s1  ;;  %p1155_p1 = scmp.lt.s32.totalorder %s1149_s1, %s1149_s1 }
  0x40   :  { %p1156_p2 = por %p1155_p1, %p1154_p0 }
  0x42   :  { %p1157_p3 = pnand %p1156_p2, %p1150_p13 }
  0x44   :  { %1160 = shalt.err (!%p1157_p3)
}
  0x45   :  { %54 = dma.hbm_to_vmem [thread:$0]  %s1443_s2, 256, %s1336_s30, [#allocation7], %s1251_s13, %s1251_s13, %s1252_s14  }
  0x46   :  { %s1255_s26 = smov [#allocation11]   ;;  %s1161_s9 = scalar_lea.hbm %s1445_s4, 2048 }
  0x47   :  { %s72_s28 = sshll.u32 %s1255_s26, 4  ;;  %p1162_p4 = scmp.ne.s32.totalorder %s1445_s4, %s1161_s9  ;;  %s73_s28 = int_to_ptr.vmem [resolvable:$true] %s72_s28 }
  0x48   :  { %p1165_p5 = scmp.lt.u32.totalorder %s1161_s9, %s1445_s4 }
  0x4a   :  { %p1167_p6 = pnand %p1165_p5, %p1162_p4 }
  0x4c   :  { %1170 = shalt.err (!%p1167_p6)
}
  0x4d   :  { %s1171_s16 = scalar_lea.vmem %s73_s28, 2048  ;;  %p1176_p8 = scmp.lt.s32.totalorder %s73_s28, %s73_s28 }
  0x4e   :  { %p1172_p7 = scmp.ne.s32.totalorder %s73_s28, %s1171_s16  ;;  %p1177_p9 = scmp.lt.s32.totalorder %s1171_s16, %s1171_s16 }
  0x50   :  { %p1178_p10 = por %p1177_p9, %p1176_p8 }
  0x52   :  { %p1179_p11 = pnand %p1178_p10, %p1172_p7 }
  0x54   :  { %1182 = shalt.err (!%p1179_p11)
}
  0x55   :  { %78 = dma.hbm_to_vmem [thread:$0]  %s1445_s4, 2048, %s73_s28, [#allocation10], %s1251_s13, %s1251_s13, %s1252_s14  }
  0x56   :  { %1237 = dma.done.wait [#allocation3], 256  }
  0x57   :  { %1238 = vsyncadd [#allocation3], 4294967040 }
  0x58   :  { %1239 = dma.done.wait [#allocation7], 512  }
  0x59   :  { %1240 = vsyncadd [#allocation7], 4294966784 }
  0x5a   :  { %1241 = dma.done.wait [#allocation10], 4096  }
  0x5b   :  { %1242 = vsyncadd [#allocation10], 4294963200  ;;  %vm98_vm0 = vcmask 130048   ;;  %v94_v0 = vld [vmem:[#allocation2] sm:$0xff]  ;;  %v95_v1 = vld [vmem:[#allocation2 + $0x8] sm:$0xff]  ;;  %s1256_s4 = smov [#allocation12]  }
  0x5c   :  { %v96_v2 = vld [vmem:[#allocation6] sm:$0xff]  ;;  %v919_v3 = vpack.c.bf16 %v95_v1, %v94_v0  ;;  %v180_v4 = vld [vmem:[#allocation8] sm:$0xff]  ;;  %v264_v6 = vld [vmem:[#allocation9 + $0x8] sm:$0xff]  ;;  %s638_s3 = sshll.u32 %s1256_s4, 4  ;;  %s1257_s27 = smov [#allocation13]   ;;  %s639_s3 = int_to_ptr.vmem [resolvable:$true] %s638_s3 }
  0x5d   :  { %769 = vmatprep.mubr.msk.f32.mxu0 %vm98_vm0, %v96_v2  ;;  %776 = vmatprep.mubr.msk.f32.mxu1 %vm98_vm0, %v180_v4  ;;  %v263_v5 = vld [vmem:[#allocation9] sm:$0xff]  ;;  %v265_v7 = vld [vmem:[#allocation9 + $0x10] sm:$0xff]  ;;  %v266_v9 = vld [vmem:[#allocation9 + $0x18] sm:$0xff]  ;;  %s650_s17 = sshll.u32 %s1257_s27, 4  ;;  %s1183_s18 = scalar_lea.vmem %s639_s3, 256  ;;  %s1392_s17 = int_to_ptr.vmem [resolvable:$true] %s650_s17 }
  0x5e   :  { %920 = vmatprep.subr.bf16.mxu0 %v919_v3  ;;  %924 = vmatprep.subr.bf16.mxu1 %v919_v3  ;;  %v927_v8 = vpack.c.bf16 %v264_v6, %v263_v5  ;;  %v97_v10 = vld [vmem:[#allocation6 + $0x8] sm:$0xff]  ;;  %v181_v11 = vld [vmem:[#allocation8 + $0x8] sm:$0xff]  ;;  %v931_v12 = vpack.c.bf16 %v266_v9, %v265_v7  ;;  %v267_v13 = vld [vmem:[#allocation9 + $0x20] sm:$0xff]  ;;  %p1184_p12 = scmp.ne.s32.totalorder %s639_s3, %s1183_s18  ;;  %p1188_p13 = scmp.lt.s32.totalorder %s639_s3, %s639_s3 }
  0x5f   :  { %922 = vmatpush3.bf16.msra.mxu0 %v919_v3  ;;  %926 = vmatpush3.bf16.msra.mxu1 %v919_v3  ;;  %v268_v14 = vld [vmem:[#allocation9 + $0x28] sm:$0xff]  ;;  %v269_v16 = vld [vmem:[#allocation9 + $0x30] sm:$0xff]  ;;  %v270_v17 = vld [vmem:[#allocation9 + $0x38] sm:$0xff]  ;;  %p1189_p0 = scmp.lt.s32.totalorder %s1183_s18, %s1183_s18 }
  0x60   :  { %928 = vmatprep.subr.bf16.mxu1 %v927_v8  ;;  %992 = vmatprep.subr.bf16.mxu0 %v927_v8  ;;  %v935_v15 = vpack.c.bf16 %v268_v14, %v267_v13  ;;  %v939_v18 = vpack.c.bf16 %v270_v17, %v269_v16  ;;  %v271_v19 = vld [vmem:[#allocation9 + $0x40] sm:$0xff]  ;;  %v272_v20 = vld [vmem:[#allocation9 + $0x48] sm:$0xff]  ;;  %v273_v22 = vld [vmem:[#allocation9 + $0x50] sm:$0xff] }
  0x61   :  { %v943_v21 = vpack.c.bf16 %v272_v20, %v271_v19  ;;  %v274_v23 = vld [vmem:[#allocation9 + $0x58] sm:$0xff]  ;;  %v275_v25 = vld [vmem:[#allocation9 + $0x60] sm:$0xff]  ;;  %v276_v26 = vld [vmem:[#allocation9 + $0x68] sm:$0xff]  ;;  %p1190_p1 = por %p1189_p0, %p1188_p13 }
  0x62   :  { %770 = vmatmul.mubr.msk.f32.vlgmr.msra.gmra.mrb[0].mxu0 %vm98_vm0, %v97_v10  ;;  %777 = vmatmul.mubr.msk.f32.vlgmr.msra.gmra.mrb[0].mxu1 %vm98_vm0, %v181_v11  ;;  %v947_v24 = vpack.c.bf16 %v274_v23, %v273_v22  ;;  %v951_v27 = vpack.c.bf16 %v276_v26, %v275_v25  ;;  %v277_v28 = vld [vmem:[#allocation9 + $0x70] sm:$0xff]  ;;  %v278_v29 = vld [vmem:[#allocation9 + $0x78] sm:$0xff]  ;;  %v279_v31 = vld [vmem:[#allocation11] sm:$0xff] }
  0x63   :  { %930 = vmatpush3.bf16.msra.mxu1 %v927_v8  ;;  %994 = vmatpush3.bf16.msra.mxu0 %v927_v8  ;;  %v955_v30 = vpack.c.bf16 %v278_v29, %v277_v28  ;;  %v280_v32 = vld [vmem:[#allocation11 + $0x8] sm:$0xff]  ;;  %v281_v34 = vld [vmem:[#allocation11 + $0x10] sm:$0xff]  ;;  %v282_v35 = vld [vmem:[#allocation11 + $0x18] sm:$0xff]  ;;  %p1191_p2 = pnand %p1190_p1, %p1184_p12 }
  0x64   :  { %932 = vmatprep.subr.bf16.mxu1 %v931_v12  ;;  %996 = vmatprep.subr.bf16.mxu0 %v931_v12  ;;  %v959_v33 = vpack.c.bf16 %v280_v32, %v279_v31  ;;  %v963_v40 = vpack.c.bf16 %v282_v35, %v281_v34  ;;  %v283_v41 = vld [vmem:[#allocation11 + $0x20] sm:$0xff]  ;;  %v284_v42 = vld [vmem:[#allocation11 + $0x28] sm:$0xff]  ;;  %v285_v44 = vld [vmem:[#allocation11 + $0x30] sm:$0xff] }
  0x65   :  { %v967_v43 = vpack.c.bf16 %v284_v42, %v283_v41  ;;  %v286_v45 = vld [vmem:[#allocation11 + $0x38] sm:$0xff]  ;;  %v287_v47 = vld [vmem:[#allocation11 + $0x40] sm:$0xff]  ;;  %v288_v48 = vld [vmem:[#allocation11 + $0x48] sm:$0xff] }
  0x66   :  { %v971_v46 = vpack.c.bf16 %v286_v45, %v285_v44  ;;  %v975_v49 = vpack.c.bf16 %v288_v48, %v287_v47  ;;  %v289_v50 = vld [vmem:[#allocation11 + $0x50] sm:$0xff]  ;;  %v290_v51 = vld [vmem:[#allocation11 + $0x58] sm:$0xff]  ;;  %v291_v53 = vld [vmem:[#allocation11 + $0x60] sm:$0xff] }
  0x67   :  { %934 = vmatpush3.bf16.msra.mxu1 %v931_v12  ;;  %998 = vmatpush3.bf16.msra.mxu0 %v931_v12  ;;  %v979_v52 = vpack.c.bf16 %v290_v51, %v289_v50  ;;  %v292_v54 = vld [vmem:[#allocation11 + $0x68] sm:$0xff]  ;;  %v293_v56 = vld [vmem:[#allocation11 + $0x70] sm:$0xff]  ;;  %v294_v57 = vld [vmem:[#allocation11 + $0x78] sm:$0xff] }
  0x68   :  { %936 = vmatprep.subr.bf16.mxu1 %v935_v15  ;;  %1000 = vmatprep.subr.bf16.mxu0 %v935_v15  ;;  %v983_v55 = vpack.c.bf16 %v292_v54, %v291_v53  ;;  %v987_v58 = vpack.c.bf16 %v294_v57, %v293_v56 }
  0x6b   :  { %938 = vmatpush3.bf16.msra.mxu1 %v935_v15  ;;  %1002 = vmatpush3.bf16.msra.mxu0 %v935_v15 }
  0x6c   :  { %940 = vmatprep.subr.bf16.mxu1 %v939_v18  ;;  %1004 = vmatprep.subr.bf16.mxu0 %v939_v18 }
  0x6f   :  { %942 = vmatpush3.bf16.msra.mxu1 %v939_v18  ;;  %1006 = vmatpush3.bf16.msra.mxu0 %v939_v18 }
  0x70   :  { %944 = vmatprep.subr.bf16.mxu1 %v943_v21  ;;  %1008 = vmatprep.subr.bf16.mxu0 %v943_v21 }
  0x73   :  { %946 = vmatpush3.bf16.msra.mxu1 %v943_v21  ;;  %1010 = vmatpush3.bf16.msra.mxu0 %v943_v21 }
  0x74   :  { %948 = vmatprep.subr.bf16.mxu1 %v947_v24  ;;  %1012 = vmatprep.subr.bf16.mxu0 %v947_v24 }
  0x77   :  { %950 = vmatpush3.bf16.msra.mxu1 %v947_v24  ;;  %1014 = vmatpush3.bf16.msra.mxu0 %v947_v24 }
  0x78   :  { %952 = vmatprep.subr.bf16.mxu1 %v951_v27  ;;  %1016 = vmatprep.subr.bf16.mxu0 %v951_v27 }
  0x7b   :  { %954 = vmatpush3.bf16.msra.mxu1 %v951_v27  ;;  %1018 = vmatpush3.bf16.msra.mxu0 %v951_v27 }
  0x7c   :  { %956 = vmatprep.subr.bf16.mxu1 %v955_v30  ;;  %1020 = vmatprep.subr.bf16.mxu0 %v955_v30 }
  0x7f   :  { %958 = vmatpush3.bf16.msra.mxu1 %v955_v30  ;;  %1022 = vmatpush3.bf16.msra.mxu0 %v955_v30 }
  0x80   :  { %960 = vmatprep.subr.bf16.mxu1 %v959_v33  ;;  %1024 = vmatprep.subr.bf16.mxu0 %v959_v33 }
 0x135   :  { %v771_v36 = vpop.f32.mrb[0].mxu0  ;;  %v778_v37 = vpop.f32.mrb[0].mxu1 }
 0x136   :  { %v171_v38 = vpop.f32.mrb[1].mxu0  ;;  %v254_v39 = vpop.f32.mrb[1].mxu1 }
 0x137   :  { %811 = vmatprep.mubr.f32.mxu1 %v171_v38  ;;  %881 = vmatprep.mubr.f32.mxu0 %v254_v39 }
 0x138   :  { %812 = vmatmul.mubr.f32.vlgmr.msra.gmra.mrb[2].mxu1 %v771_v36  ;;  %882 = vmatmul.mubr.f32.vlgmr.msra.gmra.mrb[2].mxu0 %v778_v37 }
 0x139   :  { %962 = vmatpush3.bf16.msra.mxu1 %v959_v33  ;;  %1026 = vmatpush3.bf16.msra.mxu0 %v959_v33 }
 0x13a   :  { %846 = vmatprep.mubr.f32.mxu1 %v254_v39  ;;  %916 = vmatprep.mubr.f32.mxu0 %v171_v38 }
 0x13b   :  { %964 = vmatprep.subr.bf16.mxu1 %v963_v40  ;;  %1028 = vmatprep.subr.bf16.mxu0 %v963_v40 }
 0x13d   :  { %966 = vmatpush3.bf16.msra.mxu1 %v963_v40  ;;  %1030 = vmatpush3.bf16.msra.mxu0 %v963_v40 }
 0x13e   :  { %968 = vmatprep.subr.bf16.mxu1 %v967_v43  ;;  %1032 = vmatprep.subr.bf16.mxu0 %v967_v43 }
 0x141   :  { %970 = vmatpush3.bf16.msra.mxu1 %v967_v43  ;;  %1034 = vmatpush3.bf16.msra.mxu0 %v967_v43 }
 0x142   :  { %972 = vmatprep.subr.bf16.mxu1 %v971_v46  ;;  %1036 = vmatprep.subr.bf16.mxu0 %v971_v46 }
 0x145   :  { %974 = vmatpush3.bf16.msra.mxu1 %v971_v46  ;;  %1038 = vmatpush3.bf16.msra.mxu0 %v971_v46 }
 0x146   :  { %976 = vmatprep.subr.bf16.mxu1 %v975_v49  ;;  %1040 = vmatprep.subr.bf16.mxu0 %v975_v49 }
 0x149   :  { %978 = vmatpush3.bf16.msra.mxu1 %v975_v49  ;;  %1042 = vmatpush3.bf16.msra.mxu0 %v975_v49 }
 0x14a   :  { %980 = vmatprep.subr.bf16.mxu1 %v979_v52  ;;  %1044 = vmatprep.subr.bf16.mxu0 %v979_v52 }
 0x14d   :  { %982 = vmatpush3.bf16.msra.mxu1 %v979_v52  ;;  %1046 = vmatpush3.bf16.msra.mxu0 %v979_v52 }
 0x14e   :  { %984 = vmatprep.subr.bf16.mxu1 %v983_v55  ;;  %1048 = vmatprep.subr.bf16.mxu0 %v983_v55 }
 0x151   :  { %986 = vmatpush3.bf16.msra.mxu1 %v983_v55  ;;  %1050 = vmatpush3.bf16.msra.mxu0 %v983_v55 }
 0x152   :  { %988 = vmatprep.subr.bf16.mxu1 %v987_v58  ;;  %1052 = vmatprep.subr.bf16.mxu0 %v987_v58 }
 0x155   :  { %990 = vmatpush3.bf16.msra.mxu1 %v987_v58  ;;  %1054 = vmatpush3.bf16.msra.mxu0 %v987_v58 }
 0x158   :  { %847 = vmatmul.mubr.f32.vlgmr.msra.gmra.mrb[4].mxu1 %v778_v37  ;;  %917 = vmatmul.mubr.f32.vlgmr.msra.gmra.mrb[2].mxu0 %v771_v36 }
 0x20b   :  { %v813_v59 = vpop.f32.mrb[2].mxu1 }
 0x20c   :  { %v361_v60 = vpop.f32.mrb[3].mxu1 }
 0x22b   :  { %v848_v61 = vpop.f32.mrb[4].mxu1  ;;  %v918_v62 = vpop.f32.mrb[2].mxu0 }
 0x22c   :  { %v446_v63 = vsub.f32 %v813_v59, %v848_v61  ;;  %600 = vst [vmem:[#allocation13 + $0x8] sm:$0xff] %v918_v62  ;;  %v436_v0 = vpop.f32.mrb[5].mxu1  ;;  %v588_v1 = vpop.f32.mrb[3].mxu0  ;;  %v604_v4 = vmul.f32 %v918_v62, %v918_v62 }
 0x22d   :  { %v445_v2 = vsub.f32 %v361_v60, %v436_v0  ;;  %599 = vst [vmem:[#allocation13] sm:$0xff] %v588_v1  ;;  %v603_v6 = vmul.f32 %v588_v1, %v588_v1 }
 0x22e   :  { %598 = vst [vmem:[#allocation12 + $0x8] sm:$0xff] %v446_v63  ;;  %v602_v3 = vmul.f32 %v446_v63, %v446_v63 }
 0x22f   :  { %597 = vst [vmem:[#allocation12] sm:$0xff] %v445_v2  ;;  %v601_v5 = vmul.f32 %v445_v2, %v445_v2 }
 0x230   :  { %v606_v7 = vadd.f32 %v604_v4, %v602_v3 }
 0x231   :  { %v605_v8 = vadd.f32 %v603_v6, %v601_v5 }
 0x232   :  { %1069 = vrsqrt.f32 %v606_v7  ;;  %vm616_vm1 = vcmp.eq.f32.partialorder %v606_v7, inf  ;;  %v619_v13 = vand.u32 2147483648, %v606_v7  ;;  %vm618_vm3 = vcmp.eq.f32.partialorder %v606_v7, 0.0 }
 0x233   :  { %1071 = vrsqrt.f32 %v605_v8  ;;  %vm609_vm2 = vcmp.eq.f32.partialorder %v605_v8, inf  ;;  %v612_v14 = vand.u32 2147483648, %v605_v8  ;;  %vm611_vm4 = vcmp.eq.f32.partialorder %v605_v8, 0.0 }
 0x23c   :  { %v1070_v9 = vpop.eup %1069 }
 0x23d   :  { %v1072_v10 = vpop.eup %1071  ;;  %v615_v11 = vmul.f32 %v1070_v9, %v606_v7 }
 0x23e   :  { %v608_v12 = vmul.f32 %v1072_v10, %v605_v8 }
 0x23f   :  { %v617_v15 = vsel %vm616_vm1, %v606_v7, %v615_v11 }
 0x240   :  { %v610_v16 = vsel %vm609_vm2, %v605_v8, %v608_v12  ;;  %v620_v17 = vsel %vm618_vm3, %v619_v13, %v617_v15 }
 0x241   :  { %v613_v18 = vsel %vm611_vm4, %v612_v14, %v610_v16 }
 0x242   :  { %v621_v19 = vadd.f32 %v620_v17, %v613_v18 }
 0x244   :  { %622 = vadd.xlane.f32.xlu0 %v621_v19 }
 0x245   :  { %1194 = shalt.err (!%p1191_p2)
}
 0x246   :  { %s1195_s21 = scalar_lea.hbm %s1446_s5, 256 }
 0x247   :  { %p1196_p3 = scmp.ne.s32.totalorder %s1446_s5, %s1195_s21  ;;  %p1199_p4 = scmp.lt.u32.totalorder %s1195_s21, %s1446_s5 }
 0x249   :  { %p1201_p5 = pnand %p1199_p4, %p1196_p3 }
 0x24b   :  { %1204 = shalt.err (!%p1201_p5)
}
 0x24c   :  { %644 = dma.vmem_to_hbm [thread:$0]  %s639_s3, 256, %s1446_s5, [#allocation4], %s1251_s13, %s1251_s13, %s1252_s14  }
 0x24d   :  { %s1205_s26 = scalar_lea.vmem %s1392_s17, 256  ;;  %p1210_p7 = scmp.lt.s32.totalorder %s1392_s17, %s1392_s17 }
 0x24e   :  { %p1206_p6 = scmp.ne.s32.totalorder %s1392_s17, %s1205_s26  ;;  %p1211_p8 = scmp.lt.s32.totalorder %s1205_s26, %s1205_s26 }
 0x250   :  { %p1212_p9 = por %p1211_p8, %p1210_p7 }
 0x252   :  { %p1213_p10 = pnand %p1212_p9, %p1206_p6 }
 0x254   :  { %1216 = shalt.err (!%p1213_p10)
}
 0x255   :  { %s1217_s8 = scalar_lea.hbm %s1447_s6, 256 }
 0x256   :  { %p1218_p11 = scmp.ne.s32.totalorder %s1447_s6, %s1217_s8  ;;  %p1221_p12 = scmp.lt.u32.totalorder %s1217_s8, %s1447_s6 }
 0x258   :  { %p1223_p13 = pnand %p1221_p12, %p1218_p11 }
 0x25a   :  { %1226 = shalt.err (!%p1223_p13)
}
 0x25b   :  { %656 = dma.vmem_to_hbm [thread:$0]  %s1392_s17, 256, %s1447_s6, [#allocation14], %s1251_s13, %s1251_s13, %s1252_s14  }
 0x25c   :  { %s1227_s4 = scalar_lea.hbm %s1448_s7, 16 }
 0x25d   :  { %p1228_p0 = scmp.ne.s32.totalorder %s1448_s7, %s1227_s4  ;;  %p1231_p1 = scmp.lt.u32.totalorder %s1227_s4, %s1448_s7 }
 0x25f   :  { %p1233_p2 = pnand %p1231_p1, %p1228_p0 }
 0x2d1   :  { %v623_v20 = vpop.xlane.xlu0 %622 }
 0x2d2   :  { %v624_v21 = vrot.slane %v623_v20, 4 }
 0x2d4   :  { %v625_v22 = vadd.f32 %v624_v21, %v623_v20 }
 0x2d6   :  { %v626_v23 = vrot.slane %v625_v22, 2 }
 0x2d8   :  { %v627_v24 = vadd.f32 %v626_v23, %v625_v22 }
 0x2da   :  { %v628_v25 = vrot.slane %v627_v24, 1 }
 0x2dc   :  { %v629_v26 = vadd.f32 %v628_v25, %v627_v24 }
 0x2de   :  { %1057 = vpush %v629_v26 }
 0x30f   :  { %s1058_s16 = spop %1057 }
 0x310   :  { %632 = sst [smem:[#allocation15]] %s1058_s16 }
 0x311   :  { %1236 = shalt.err (!%p1233_p2)
}
 0x312   :  { %s1258_s13 = smov [#allocation15]  }
 0x313   :  { %664 = dma.smem_to_hbm %s1258_s13, 16, %s1448_s7, [#allocation5]  }
 0x314   :  { %1243 = dma.done.wait [#allocation4], 256  }
 0x315   :  { %1244 = vsyncadd [#allocation4], 4294967040 }
 0x316   :  { %1245 = dma.done.wait [#allocation14], 256  }
 0x317   :  { %1246 = vsyncadd [#allocation14], 4294967040 }
 0x318   :  { %1247 = dma.done.wait [#allocation5], 16  }
 0x319   :  { %1248 = vsyncadd [#allocation5], 4294967280 }
 0x31a   :  { %674 = sfence }
 0x31b   :  { %675 = vsyncpa [#allocation3], 1 }
 0x31c   :  { %676 = vsyncpa [#allocation7], 1 }
 0x31d   :  { %677 = vsyncpa [#allocation10], 1 }
 0x31e   :  { %678 = vsyncpa [#allocation4], 1 }
 0x31f   :  { %679 = vsyncpa [#allocation14], 1 }
 0x320   :  { %680 = vsyncpa [#allocation5], 1 }

</bundles_post_ra>
